<compile_context>
chip_gen: v6e
topology: v6e:2x2x1
jax: 0.10.0
libtpu: 0.0.40
codegen_flags: <defaults>
</compile_context>

<pallas_src>
import functools

import jax
import jax.numpy as jnp
from jax.experimental import pallas as pl
from jax.experimental.pallas import tpu as pltpu


def _mlp_kernel(num_layers, x_ref, *refs):
    """refs = (w0, b0, w1, b1, ..., w_{L-1}, b_{L-1}, out_ref).

    w_l : (in_dim, out_dim)  -- already transposed on the host (MXU-ready)
    b_l : (1, out_dim)       -- float32
    """
    out_ref = refs[-1]
    param_refs = refs[:-1]
    compute_dtype = x_ref.dtype

    h = x_ref[...]
    for layer in range(num_layers):
        w_ref = param_refs[2 * layer]
        b_ref = param_refs[2 * layer + 1]
        # y = h @ W + b, then ReLU  (matches nn.Linear + nn.ReLU).
        acc = jnp.dot(h, w_ref[...], preferred_element_type=jnp.float32)
        acc = jnp.maximum(acc + b_ref[...], 0.0)      # bias + ReLU in f32 (VPU)
        if layer + 1 < num_layers:
            h = acc.astype(compute_dtype)             # MXU operand dtype for next layer
        else:
            h = acc
    out_ref[...] = h.astype(out_ref.dtype)


def _round_up(x, m):
    return ((x + m - 1) // m) * m


def property_embed_forward(x, weights, biases, *, block_b=None,
                           compute_dtype=None, out_dtype=None):
    """Fused MLP forward (all Linear+ReLU layers in one Pallas kernel).

    Args:
        x:        (B, input_dim) array.
        weights:  list of (out_dim, in_dim) arrays (PyTorch nn.Linear layout).
        biases:   list of (out_dim,) arrays.
        block_b:  batch-tile rows per grid step (multiple of 8); default
                  min(256, round_up(B, 8)).
        compute_dtype: MXU operand dtype (default x.dtype; bf16 recommended in
                  production: full MXU rate + half the weight VMEM/DMA bytes).
        out_dtype: output dtype (default x.dtype).
    Returns:
        (B, embedding_dim) array.
    """
    B, d_in = x.shape
    num_layers = len(weights)
    out_dim = weights[-1].shape[0]

    orig_dtype = x.dtype
    if compute_dtype is None:
        compute_dtype = orig_dtype
    if out_dtype is None:
        out_dtype = orig_dtype

    if block_b is None:
        block_b = min(256, _round_up(B, 8))
    grid = (pl.cdiv(B, block_b),)

    # One-time host-side layout / dtype prep (outside the kernel):
    #   * transpose to (in_dim, out_dim) so the MXU consumes W directly,
    #   * cast weights/x to compute_dtype (halves HBM->VMEM bytes for bf16).
    x_c = x.astype(compute_dtype)
    w_t = [jnp.asarray(w).T.astype(compute_dtype) for w in weights]
    b_2d = [jnp.asarray(b).reshape(1, -1).astype(jnp.float32) for b in biases]

    in_specs = [pl.BlockSpec((block_b, d_in), lambda i: (i, 0))]
    params = []
    for w, b in zip(w_t, b_2d):
        # Grid-invariant operands: single-buffer to halve resident VMEM.
        in_specs.append(pl.BlockSpec(w.shape, lambda i: (0, 0),
                                     pipeline_mode=pl.Buffered(1)))
        in_specs.append(pl.BlockSpec(b.shape, lambda i: (0, 0),
                                     pipeline_mode=pl.Buffered(1)))
        params.extend([w, b])

    out_specs = pl.BlockSpec((block_b, out_dim), lambda i: (i, 0))

    # VMEM budget: single-buffered weights/biases + double-buffered x/out tiles.
    c_bytes = jnp.dtype(compute_dtype).itemsize
    o_bytes = jnp.dtype(out_dtype).itemsize
    resident = (sum(w.size for w in w_t) * c_bytes
                + sum(b.size for b in b_2d) * 4
                + 2 * block_b * d_in * c_bytes
                + 2 * block_b * out_dim * o_bytes)
    # Headroom for live activation vregs / compiler scratch; clamp at v7x's 64 MiB.
    # TODO(synk): for production dims where resident weights alone exceed ~40 MiB,
    # split layers across pallas_calls or add a K/N tiling grid axis.
    vmem_limit = int(min(max(2 * resident + (8 << 20), 32 << 20), 64 << 20))

    return pl.pallas_call(
        functools.partial(_mlp_kernel, num_layers),
        out_shape=jax.ShapeDtypeStruct((B, out_dim), out_dtype),
        grid_spec=pltpu.PrefetchScalarGridSpec(
            num_scalar_prefetch=0,
            grid=grid,
            in_specs=in_specs,
            out_specs=out_specs,
        ),
        compiler_params=pltpu.CompilerParams(
            dimension_semantics=("parallel",),
            vmem_limit_bytes=vmem_limit),
    )(x_c, *params)


def init_params(key, input_dim, embedding_dim, embedding_layer_num):
    """Deterministic parameter init mimicking nn.Linear's uniform init."""
    dims = [(embedding_dim, input_dim)] + \
           [(embedding_dim, embedding_dim)] * embedding_layer_num
    weights, biases = [], []
    for (out_d, in_d) in dims:
        key, kw, kb = jax.random.split(key, 3)
        bound = 1.0 / jnp.sqrt(in_d)
        weights.append(jax.random.uniform(kw, (out_d, in_d), jnp.float32,
                                          minval=-bound, maxval=bound))
        biases.append(jax.random.uniform(kb, (out_d,), jnp.float32,
                                         minval=-bound, maxval=bound))
    return weights, biases


def reference_forward(x, weights, biases):
    h = x
    for w, b in zip(weights, biases):
        h = jnp.maximum(h @ w.T + b, 0.0)
    return h


if __name__ == "__main__":
    key = jax.random.PRNGKey(0)

    batch = 64
    input_dim = 16
    embedding_dim = 128      # multiple of 128 -> lane-dense stores, full MXU N dim
    embedding_layer_num = 2

    key, kx = jax.random.split(key)
    x = jax.random.normal(kx, (batch, input_dim), jnp.float32)
    weights, biases = init_params(key, input_dim, embedding_dim,
                                  embedding_layer_num)

    ref = reference_forward(x, weights, biases)

    # f32 path: block_b=16 -> grid=(4,), exercises pipelining / megacore sharding.
    out = property_embed_forward(x, weights, biases, block_b=16)
    out = jax.block_until_ready(out)
    assert out.shape == (batch, embedding_dim)
    assert jnp.allclose(out, ref, atol=1e-4, rtol=1e-4), "f32 mismatch vs reference"

    # bf16-operand / f32-accumulate path (production-recommended; loose check).
    out_bf16 = property_embed_forward(x, weights, biases, block_b=16,
                                      compute_dtype=jnp.bfloat16,
                                      out_dtype=jnp.float32)
    out_bf16 = jax.block_until_ready(out_bf16)
    assert jnp.allclose(out_bf16, ref, atol=1e-1, rtol=1e-1), \
        "bf16 mismatch vs reference"

    print("KERNEL_OK")
</pallas_src>

<mosaic_0001>
module attributes {stable_mosaic.version = 11 : i64} {
  func.func @_mlp_kernel(%arg0: i32, %arg1: memref<16x16xf32, #tpu.memory_space<vmem>>, %arg2: memref<16x128xf32, #tpu.memory_space<vmem>>, %arg3: memref<1x128xf32, #tpu.memory_space<vmem>>, %arg4: memref<128x128xf32, #tpu.memory_space<vmem>>, %arg5: memref<1x128xf32, #tpu.memory_space<vmem>>, %arg6: memref<128x128xf32, #tpu.memory_space<vmem>>, %arg7: memref<1x128xf32, #tpu.memory_space<vmem>>, %arg8: memref<16x128xf32, #tpu.memory_space<vmem>>) attributes {dimension_semantics = [#tpu.dimension_semantics<parallel>], iteration_bounds = array<i64: 4>, scalar_prefetch = 0 : i64, scratch_operands = 0 : i64, tpu.core_type = #tpu.core_type<tc>, window_params = [{transform_indices = @transform_0, window_bounds = array<i64: 16, 16>}, {pipeline_mode = #tpu.pipeline_mode<synchronous>, transform_indices = @transform_1, window_bounds = array<i64: 16, 128>}, {pipeline_mode = #tpu.pipeline_mode<synchronous>, transform_indices = @transform_2, window_bounds = array<i64: 1, 128>}, {pipeline_mode = #tpu.pipeline_mode<synchronous>, transform_indices = @transform_3, window_bounds = array<i64: 128, 128>}, {pipeline_mode = #tpu.pipeline_mode<synchronous>, transform_indices = @transform_4, window_bounds = array<i64: 1, 128>}, {pipeline_mode = #tpu.pipeline_mode<synchronous>, transform_indices = @transform_5, window_bounds = array<i64: 128, 128>}, {pipeline_mode = #tpu.pipeline_mode<synchronous>, transform_indices = @transform_6, window_bounds = array<i64: 1, 128>}, {transform_indices = @transform_7, window_bounds = array<i64: 16, 128>}]} {
    %c0 = arith.constant 0 : index
    %c0_0 = arith.constant 0 : index
    %0 = vector.load %arg1[%c0, %c0_0] : memref<16x16xf32, #tpu.memory_space<vmem>>, vector<16x16xf32>
    %c0_1 = arith.constant 0 : index
    %c0_2 = arith.constant 0 : index
    %1 = vector.load %arg2[%c0_1, %c0_2] : memref<16x128xf32, #tpu.memory_space<vmem>>, vector<16x128xf32>
    %cst = arith.constant dense<0.000000e+00> : vector<16x128xf32>
    %2 = tpu.matmul %0, %1, %cst {dimension_numbers = #tpu.dot_dimension_numbers<[1], [0], [0], [1], [0, 0, 1, 1], [], []>} : vector<16x16xf32>, vector<16x128xf32>, vector<16x128xf32> -> vector<16x128xf32>
    %c0_3 = arith.constant 0 : index
    %c0_4 = arith.constant 0 : index
    %3 = vector.load %arg3[%c0_3, %c0_4] : memref<1x128xf32, #tpu.memory_space<vmem>>, vector<1x128xf32>
    %4 = vector.broadcast %3 : vector<1x128xf32> to vector<16x128xf32>
    %5 = arith.addf %2, %4 : vector<16x128xf32>
    %cst_5 = arith.constant 0.000000e+00 : f32
    %6 = vector.broadcast %cst_5 : f32 to vector<16x128xf32>
    %7 = arith.maximumf %5, %6 : vector<16x128xf32>
    %c0_6 = arith.constant 0 : index
    %c0_7 = arith.constant 0 : index
    %8 = vector.load %arg4[%c0_6, %c0_7] : memref<128x128xf32, #tpu.memory_space<vmem>>, vector<128x128xf32>
    %cst_8 = arith.constant dense<0.000000e+00> : vector<16x128xf32>
    %9 = tpu.matmul %7, %8, %cst_8 {dimension_numbers = #tpu.dot_dimension_numbers<[1], [0], [0], [1], [0, 0, 1, 1], [], []>} : vector<16x128xf32>, vector<128x128xf32>, vector<16x128xf32> -> vector<16x128xf32>
    %c0_9 = arith.constant 0 : index
    %c0_10 = arith.constant 0 : index
    %10 = vector.load %arg5[%c0_9, %c0_10] : memref<1x128xf32, #tpu.memory_space<vmem>>, vector<1x128xf32>
    %11 = vector.broadcast %10 : vector<1x128xf32> to vector<16x128xf32>
    %12 = arith.addf %9, %11 : vector<16x128xf32>
    %cst_11 = arith.constant 0.000000e+00 : f32
    %13 = vector.broadcast %cst_11 : f32 to vector<16x128xf32>
    %14 = arith.maximumf %12, %13 : vector<16x128xf32>
    %c0_12 = arith.constant 0 : index
    %c0_13 = arith.constant 0 : index
    %15 = vector.load %arg6[%c0_12, %c0_13] : memref<128x128xf32, #tpu.memory_space<vmem>>, vector<128x128xf32>
    %cst_14 = arith.constant dense<0.000000e+00> : vector<16x128xf32>
    %16 = tpu.matmul %14, %15, %cst_14 {dimension_numbers = #tpu.dot_dimension_numbers<[1], [0], [0], [1], [0, 0, 1, 1], [], []>} : vector<16x128xf32>, vector<128x128xf32>, vector<16x128xf32> -> vector<16x128xf32>
    %c0_15 = arith.constant 0 : index
    %c0_16 = arith.constant 0 : index
    %17 = vector.load %arg7[%c0_15, %c0_16] : memref<1x128xf32, #tpu.memory_space<vmem>>, vector<1x128xf32>
    %18 = vector.broadcast %17 : vector<1x128xf32> to vector<16x128xf32>
    %19 = arith.addf %16, %18 : vector<16x128xf32>
    %cst_17 = arith.constant 0.000000e+00 : f32
    %20 = vector.broadcast %cst_17 : f32 to vector<16x128xf32>
    %21 = arith.maximumf %19, %20 : vector<16x128xf32>
    %c0_18 = arith.constant 0 : index
    %c0_19 = arith.constant 0 : index
    %22 = vector.load %arg8[%c0_18, %c0_19] : memref<16x128xf32, #tpu.memory_space<vmem>>, vector<16x128xf32>
    tpu.vector_store %arg8[%c0_18, %c0_19], %21 {strides = array<i32>} : memref<16x128xf32, #tpu.memory_space<vmem>>, vector<16x128xf32>,
    return
  }
  func.func @transform_0(%arg0: i32) -> (i32, i32) {
    %c0_i32 = arith.constant 0 : i32
    %c0_i32_0 = arith.constant 0 : i32
    return %arg0, %c0_i32 : i32, i32
  }
  func.func @transform_1(%arg0: i32) -> (i32, i32) {
    %c0_i32 = arith.constant 0 : i32
    %c0_i32_0 = arith.constant 0 : i32
    %c0_i32_1 = arith.constant 0 : i32
    return %c0_i32, %c0_i32_0 : i32, i32
  }
  func.func @transform_2(%arg0: i32) -> (i32, i32) {
    %c0_i32 = arith.constant 0 : i32
    %c0_i32_0 = arith.constant 0 : i32
    %c0_i32_1 = arith.constant 0 : i32
    return %c0_i32, %c0_i32_0 : i32, i32
  }
  func.func @transform_3(%arg0: i32) -> (i32, i32) {
    %c0_i32 = arith.constant 0 : i32
    %c0_i32_0 = arith.constant 0 : i32
    %c0_i32_1 = arith.constant 0 : i32
    return %c0_i32, %c0_i32_0 : i32, i32
  }
  func.func @transform_4(%arg0: i32) -> (i32, i32) {
    %c0_i32 = arith.constant 0 : i32
    %c0_i32_0 = arith.constant 0 : i32
    %c0_i32_1 = arith.constant 0 : i32
    return %c0_i32, %c0_i32_0 : i32, i32
  }
  func.func @transform_5(%arg0: i32) -> (i32, i32) {
    %c0_i32 = arith.constant 0 : i32
    %c0_i32_0 = arith.constant 0 : i32
    %c0_i32_1 = arith.constant 0 : i32
    return %c0_i32, %c0_i32_0 : i32, i32
  }
  func.func @transform_6(%arg0: i32) -> (i32, i32) {
    %c0_i32 = arith.constant 0 : i32
    %c0_i32_0 = arith.constant 0 : i32
    %c0_i32_1 = arith.constant 0 : i32
    return %c0_i32, %c0_i32_0 : i32, i32
  }
  func.func @transform_7(%arg0: i32) -> (i32, i32) {
    %c0_i32 = arith.constant 0 : i32
    %c0_i32_0 = arith.constant 0 : i32
    return %arg0, %c0_i32 : i32, i32
  }
}

</mosaic_0001>

<bundles_post_ra>
// kernel: tpu_custom_call.1
= control target key start
LH: loop header
LB: loop body
LE: loop exit
PB: predicated region body
PF: predicated region fallthrough
CT: control target
= control target key end

     0   :  { %12 = vsyncpa [#allocation3], 0  ;;  %s1236_s0 = inlined_call_operand.vmem [shape: f32[64,16], index: 0, kind: input, shape index: {}]   ;;  %s1237_s1 = inlined_call_operand.vmem [shape: f32[16,128], index: 1, kind: input, shape index: {}]   ;;  %s1238_s2 = inlined_call_operand.vmem [shape: f32[1,128], index: 2, kind: input, shape index: {}]   ;;  %s1239_s3 = inlined_call_operand.hbm [shape: f32[128,128], index: 3, kind: input, shape index: {}]   ;;  %s1240_s4 = inlined_call_operand.vmem [shape: f32[1,128], index: 4, kind: input, shape index: {}]   ;;  %s1241_s5 = inlined_call_operand.hbm [shape: f32[128,128], index: 5, kind: input, shape index: {}]   ;;  %s1242_s6 = inlined_call_operand.vmem [shape: f32[1,128], index: 6, kind: input, shape index: {}]   ;;  %s1243_s7 = inlined_call_operand.hbm [shape: f32[64,128], index: 7, kind: output, shape index: {}]  }
   0x1   :  { %13 = vsyncpa [#allocation6], 0 }
   0x2   :  { %14 = vsyncpa [#allocation4], 0 }
   0x3   :  { %16 = vsyncpa [#allocation4 + $0x1], 0  ;;  %s1077_s24 = smov 0   ;;  %s1079_s25 = smov 0  }
   0x4   :  { %s1081_s26 = smov 0   ;;  %s1083_s27 = smov 0  }
   0x5 LB: > { %s1098_s28 = sadd.s32 4294967295, %s1028_s27   ;;  %s705_s29 = sadd.s32 4294967294, %s1028_s27   ;;  %s1028_s27 = sphi %s1083_s27, %s1257_s27   ;;  %s1024_s26 = sphi %s1081_s26, %s1256_s26   ;;  %s1020_s25 = sphi %s1079_s25, %s1255_s25   ;;  %s1016_s24 = sphi %s1077_s24, %s1254_s24  }
   0x6   : > { %s1102_s30 = sadd.s32 1, %s1028_s27   ;;  %s181_s8 = sadd.s32 1, %s1024_s26 }
   0x7   : > { %s178_s9 = ssub.s32 %s1028_s27, %s1102_s30  ;;  %p191_p0 = scmp.ne.s32.totalorder %s1024_s26, %s1020_s25 }
   0x8   : > { %p179_p1 = scmp.eq.s32.totalorder %s178_s9, 0  ;;  %p192_p2 = scmp.eq.s32.totalorder %s1098_s28, 3 }
   0x9   : > { %p197_p3 = scmp.ne.s32.totalorder %s1020_s25, %s1016_s24  ;;  %p198_p4 = scmp.eq.s32.totalorder %s705_s29, 3 }
   0xa   : > { %s1113_s10 = scalar_select %p179_p1, %s1024_s26, %s181_s8  }
   0xb   : > { %p1115_p5 = por %p192_p2, %p191_p0  ;;  %p1119_p6 = por %p198_p4, %p197_p3 }
   0xc   : > { %p706_p7 = scmp.ge.s32.totalorder %s1028_s27, 1  ;;  %p205_p8 = scmp.lt.s32.totalorder %s1028_s27, 5 }
   0xd   : > { %s1246_s12 = scalar_select %p1119_p6, 1, 0 }
   0xe   : > { %p1244_p9 = scmp.eq.s32.totalorder %s1098_s28, 0  ;;  %p1126_p10 = pnand %p706_p7, %p205_p8 }
   0xf   : > { %s1030_s14 = smov [#allocation2]   ;;  %s1031_s17 = smov [#allocation5]  }
  0x10   : > { %s223_s15 = sshll.u32 %s1030_s14, 4  ;;  %p854_p11 = pneg %p1126_p10  ;;  %s224_s15 = int_to_ptr.vmem [resolvable:$true] %s223_s15 }
  0x11   : > { %s239_s18 = sshll.u32 %s1031_s17, 4  ;;  %s919_s19 = scalar_lea.vmem %s224_s15, 2048  ;;  %s240_s18 = int_to_ptr.vmem [resolvable:$true] %s239_s18 }
  0x12   : > { %p1134_p12 = pnand %p1244_p9, %p854_p11  ;;  %p920_p0 = scmp.ne.s32.totalorder %s224_s15, %s919_s19 }
  0x13   : > { %p927_p3 = scmp.lt.s32.totalorder %s224_s15, %s224_s15  ;;  %p928_p4 = scmp.lt.s32.totalorder %s919_s19, %s919_s19 }
  0x14   : > { %p910_p13 = pneg %p1134_p12 }
  0x15   : > { %p929_p7 = por %p928_p4, %p927_p3 }
  0x16   : > { %p922_p1 = pnand %p920_p0, %p910_p13 }
  0x18   : > { %p923_p2 = pneg %p922_p1 }
  0x1a   : > { %p930_p8 = pnand %p929_p7, %p923_p2 }
  0x1c   : > { %933 = shalt.err (!%p930_p8)
}
  0x1d   : > { %s1032_s20 = smov 128   ;;  %s1033_s21 = smov 8  }
  0x1e   : > { %857 = dma.hbm_to_vmem [thread:$0]  (!%p1134_p12), %s1239_s3, 2048, %s224_s15, [#allocation3], %s1032_s20, %s1032_s20, %s1033_s21  }
  0x1f   : > { %s945_s29 = scalar_lea.vmem %s240_s18, 2048  ;;  %p953_p9 = scmp.lt.s32.totalorder %s240_s18, %s240_s18 }
  0x20   : > { %p946_p11 = scmp.ne.s32.totalorder %s240_s18, %s945_s29  ;;  %p954_p6 = scmp.lt.s32.totalorder %s945_s29, %s945_s29 }
  0x22   : > { %p948_p0 = pnand %p946_p11, %p910_p13  ;;  %p955_p3 = por %p954_p6, %p953_p9 }
  0x24   : > { %p949_p1 = pneg %p948_p0 }
  0x26   : > { %p956_p2 = pnand %p955_p3, %p949_p1 }
  0x28   : > { %959 = shalt.err (!%p956_p2)
}
  0x29   : > { %860 = dma.hbm_to_vmem [thread:$0]  (!%p1134_p12), %s1241_s5, 2048, %s240_s18, [#allocation6], %s1032_s20, %s1032_s20, %s1033_s21  }
  0x2a   : > { %267 = sbr.rel (%p1126_p10) target bundleno = 672 (0x2a0), region = 48  ;;  %p1249_p4 = scmp.eq.s32.totalorder (!%p1126_p10), %s1098_s28, 0 }
  0x2f   : > { %1003 = dma.done.wait (%p1249_p4), [#allocation3], 2048   ;;  %p1250_p13 = pmov %p1249_p4 }
  0x30   : > { %p1251_p7 = pmov %p1249_p4 }
  0x31   : > { %1005 = vsyncadd (%p1250_p13), [#allocation3], 4294965248 }
  0x32   : > { %1007 = dma.done.wait (%p1251_p7), [#allocation6], 2048   ;;  %p1252_p6 = pmov %p1249_p4 }
  0x33   : > { %s714_s14 = sshll.u32 %s1098_s28, 1  ;;  %vm321_vm0 = vcmask 130048   ;;  %v313_v0 = vld [vmem:[%s1237_s1 + $0x8] sm:$0xff]  ;;  %v312_v1 = vld [vmem:[%s1237_s1] sm:$0xff]  ;;  %v420_v3 = vld [vmem:[#allocation2 + $0x78] sm:$0xff]  ;;  %s300_s9 = sand.u32 1, %s1020_s25  }
  0x34   : > { %1009 = vsyncadd (%p1252_p6), [#allocation6], 4294965248  ;;  %p304_p9 = scmp.lt.s32.totalorder %s714_s14, 7  ;;  %767 = vmatprep.subr.mxu0 %v313_v0  ;;  %v419_v4 = vld [vmem:[#allocation2 + $0x70] sm:$0xff]  ;;  %774 = vmatprep.subr.mxu1 %v420_v3  ;;  %v418_v6 = vld [vmem:[#allocation2 + $0x68] sm:$0xff]  ;;  %s726_s18 = sshll.u32 %s1098_s28, 8 }
  0x35   : > { %768 = vmatpush3.msra.mxu0 %v313_v0  ;;  %775 = vmatpush3.msra.mxu1 %v420_v3  ;;  %v417_v7 = vld [vmem:[#allocation2 + $0x60] sm:$0xff]  ;;  %v416_v8 = vld [vmem:[#allocation2 + $0x58] sm:$0xff]  ;;  %v415_v9 = vld [vmem:[#allocation2 + $0x50] sm:$0xff]  ;;  %s1194_s21 = scalar_lea.hbm %s1243_s7, %s726_s18  ;;  %s1196_s22 = scalar_lea.sflag [#allocation4], %s300_s9 }
  0x36   : > { %s1259_s14 = smov (!%p304_p9, %s714_s14), 7  ;;  %769 = vmatprep.subr.mxu0 %v312_v1  ;;  %776 = vmatprep.subr.mxu1 %v419_v4  ;;  %v414_v10 = vld [vmem:[#allocation2 + $0x48] sm:$0xff]  ;;  %v413_v11 = vld [vmem:[#allocation2 + $0x40] sm:$0xff]  ;;  %v412_v12 = vld [vmem:[#allocation2 + $0x38] sm:$0xff]  ;;  %s1034_s28 = smov [#allocation7]  }
  0x37   : > { %s715_s15 = sshll.u32 %s1259_s14, 3  ;;  %770 = vmatpush3.msra.mxu0 %v312_v1  ;;  %777 = vmatpush3.msra.mxu1 %v419_v4  ;;  %v411_v13 = vld [vmem:[#allocation2 + $0x30] sm:$0xff]  ;;  %v410_v14 = vld [vmem:[#allocation2 + $0x28] sm:$0xff]  ;;  %v409_v15 = vld [vmem:[#allocation2 + $0x20] sm:$0xff]  ;;  %s713_s14 = sshll.u32 %s300_s9, 4 }
  0x38   : > { %s307_s17 = scalar_lea.vmem %s1236_s0, %s715_s15  ;;  %778 = vmatprep.subr.mxu1 %v418_v6  ;;  %v408_v16 = vld [vmem:[#allocation2 + $0x18] sm:$0xff]  ;;  %v407_v17 = vld [vmem:[#allocation2 + $0x10] sm:$0xff]  ;;  %v406_v18 = vld [vmem:[#allocation2 + $0x8] sm:$0xff]  ;;  %s302_s16 = scalar_lea.vmem [#allocation7], %s713_s14 }
  0x39   : > { %v310_v2 = vld [vmem:[%s307_s17] sm:$0xff]  ;;  %v311_v5 = vld [vmem:[%s307_s17 + $0x8] sm:$0xff]  ;;  %779 = vmatpush3.msra.mxu1 %v418_v6  ;;  %v520_v20 = vld [vmem:[#allocation5 + $0x78] sm:$0xff]  ;;  %s621_s17 = sshll.u32 %s302_s16, 4  ;;  %s964_s29 = sshll.u32 %s1034_s28, 4  ;;  %s1189_s17 = int_to_ptr.vmem [resolvable:$true] %s621_s17  ;;  %s965_s29 = int_to_ptr.vmem [resolvable:$false] %s964_s29 }
  0x3a   : > { %771 = vmatprep.mubr.msk.f32.mxu0 %vm321_vm0, %v310_v2  ;;  %780 = vmatprep.subr.mxu1 %v417_v7  ;;  %v405_v19 = vld [vmem:[#allocation2] sm:$0xff]  ;;  %v519_v21 = vld [vmem:[#allocation5 + $0x70] sm:$0xff]  ;;  %v518_v22 = vld [vmem:[#allocation5 + $0x68] sm:$0xff]  ;;  %s960_s23 = scalar_lea.vmem %s1189_s17, 256  ;;  %s966_s8 = scalar_lea.vmem %s965_s29, 512 }
  0x3b   : > { %772 = vmatmul.mubr.msk.f32.vlgmr.msra.gmra.mxu0 %vm321_vm0, %v311_v5  ;;  %781 = vmatpush3.msra.mxu1 %v417_v7  ;;  %v517_v23 = vld [vmem:[#allocation5 + $0x60] sm:$0xff]  ;;  %v516_v24 = vld [vmem:[#allocation5 + $0x58] sm:$0xff]  ;;  %v515_v25 = vld [vmem:[#allocation5 + $0x50] sm:$0xff]  ;;  %p961_p10 = scmp.ne.s32.totalorder %s1189_s17, %s960_s23  ;;  %p967_p11 = scmp.lt.s32.totalorder %s1189_s17, %s965_s29 }
  0x3c   : > { %782 = vmatprep.subr.mxu1 %v416_v8  ;;  %809 = vmatprep.subr.mxu0 %v520_v20  ;;  %v514_v26 = vld [vmem:[#allocation5 + $0x48] sm:$0xff]  ;;  %v513_v27 = vld [vmem:[#allocation5 + $0x40] sm:$0xff]  ;;  %v512_v28 = vld [vmem:[#allocation5 + $0x38] sm:$0xff]  ;;  %p968_p0 = scmp.lt.s32.totalorder %s966_s8, %s960_s23 }
  0x3d   : > { %783 = vmatpush3.msra.mxu1 %v416_v8  ;;  %810 = vmatpush3.msra.mxu0 %v520_v20  ;;  %v511_v29 = vld [vmem:[#allocation5 + $0x30] sm:$0xff]  ;;  %v510_v30 = vld [vmem:[#allocation5 + $0x28] sm:$0xff]  ;;  %v509_v31 = vld [vmem:[#allocation5 + $0x20] sm:$0xff]  ;;  %p962_p12 = pnand %p961_p10, %p1115_p5 }
  0x3e   : > { %784 = vmatprep.subr.mxu1 %v415_v9  ;;  %811 = vmatprep.subr.mxu0 %v519_v21  ;;  %v716_v32 = vld [vmem:[%s1238_s2] ss:$0 sm:$0xff]  ;;  %v508_v39 = vld [vmem:[#allocation5 + $0x18] sm:$0xff]  ;;  %v507_v40 = vld [vmem:[#allocation5 + $0x10] sm:$0xff]  ;;  %p969_p1 = por %p968_p0, %p967_p11 }
  0x3f   : > { %785 = vmatpush3.msra.mxu1 %v415_v9  ;;  %812 = vmatpush3.msra.mxu0 %v519_v21  ;;  %v506_v41 = vld [vmem:[#allocation5 + $0x8] sm:$0xff]  ;;  %v505_v42 = vld [vmem:[#allocation5] sm:$0xff]  ;;  %p963_p8 = pneg %p962_p12 }
  0x40   : > { %786 = vmatprep.subr.mxu1 %v414_v10  ;;  %813 = vmatprep.subr.mxu0 %v518_v22  ;;  %v719_v43 = vld [vmem:[%s1240_s4] ss:$0 sm:$0xff] }
  0x41   : > { %787 = vmatpush3.msra.mxu1 %v414_v10  ;;  %814 = vmatpush3.msra.mxu0 %v518_v22  ;;  %v720_v50 = vld [vmem:[%s1242_s6] ss:$0 sm:$0xff]  ;;  %p970_p3 = pnand %p969_p1, %p963_p8 }
  0x42   : > { %788 = vmatprep.subr.mxu1 %v413_v11  ;;  %815 = vmatprep.subr.mxu0 %v517_v23 }
  0x43   : > { %789 = vmatpush3.msra.mxu1 %v413_v11  ;;  %816 = vmatpush3.msra.mxu0 %v517_v23 }
  0x44   : > { %790 = vmatprep.subr.mxu1 %v412_v12  ;;  %817 = vmatprep.subr.mxu0 %v516_v24 }
  0x45   : > { %791 = vmatpush3.msra.mxu1 %v412_v12  ;;  %818 = vmatpush3.msra.mxu0 %v516_v24 }
  0x46   : > { %792 = vmatprep.subr.mxu1 %v411_v13  ;;  %819 = vmatprep.subr.mxu0 %v515_v25 }
  0x47   : > { %793 = vmatpush3.msra.mxu1 %v411_v13  ;;  %820 = vmatpush3.msra.mxu0 %v515_v25 }
  0x48   : > { %794 = vmatprep.subr.mxu1 %v410_v14  ;;  %821 = vmatprep.subr.mxu0 %v514_v26 }
  0x49   : > { %795 = vmatpush3.msra.mxu1 %v410_v14  ;;  %822 = vmatpush3.msra.mxu0 %v514_v26 }
  0x4a   : > { %796 = vmatprep.subr.mxu1 %v409_v15  ;;  %823 = vmatprep.subr.mxu0 %v513_v27 }
  0x4b   : > { %797 = vmatpush3.msra.mxu1 %v409_v15  ;;  %824 = vmatpush3.msra.mxu0 %v513_v27 }
  0x4c   : > { %798 = vmatprep.subr.mxu1 %v408_v16  ;;  %825 = vmatprep.subr.mxu0 %v512_v28 }
  0x4d   : > { %799 = vmatpush3.msra.mxu1 %v408_v16  ;;  %826 = vmatpush3.msra.mxu0 %v512_v28 }
  0x4e   : > { %800 = vmatprep.subr.mxu1 %v407_v17  ;;  %827 = vmatprep.subr.mxu0 %v511_v29 }
  0x4f   : > { %801 = vmatpush3.msra.mxu1 %v407_v17  ;;  %828 = vmatpush3.msra.mxu0 %v511_v29 }
  0x50   : > { %802 = vmatprep.subr.mxu1 %v406_v18  ;;  %829 = vmatprep.subr.mxu0 %v510_v30 }
  0x51   : > { %803 = vmatpush3.msra.mxu1 %v406_v18  ;;  %830 = vmatpush3.msra.mxu0 %v510_v30 }
  0x52   : > { %804 = vmatprep.subr.mxu1 %v405_v19  ;;  %831 = vmatprep.subr.mxu0 %v509_v31 }
  0x53   : > { %805 = vmatpush3.msra.mxu1 %v405_v19  ;;  %832 = vmatpush3.msra.mxu0 %v509_v31 }
  0x54   : > { %833 = vmatprep.subr.mxu0 %v508_v39 }
  0x55   : > { %834 = vmatpush3.msra.mxu0 %v508_v39 }
  0x56   : > { %835 = vmatprep.subr.mxu0 %v507_v40 }
  0x57   : > { %836 = vmatpush3.msra.mxu0 %v507_v40 }
  0x58   : > { %837 = vmatprep.subr.mxu0 %v506_v41 }
  0x59   : > { %838 = vmatpush3.msra.mxu0 %v506_v41 }
  0x5a   : > { %839 = vmatprep.subr.mxu0 %v505_v42 }
  0x5b   : > { %840 = vmatpush3.msra.mxu0 %v505_v42 }
  0xfb   : > { %v773_v33 = vpop.f32.mrf.mxu0 }
  0xfc   : > { %v400_v34 = vadd.f32 %v773_v33, %v716_v32 }
  0xfd   : > { %v394_v35 = vpop.f32.mrf.mxu0 }
  0xfe   : > { %v395_v36 = vadd.f32 %v716_v32, %v394_v35  ;;  %v404_v38 = vmax.f32 %v400_v34, 0.0 }
 0x100   : > { %v403_v37 = vmax.f32 %v395_v36, 0.0 }
 0x102   : > { %806 = vmatprep.mubr.f32.mxu1 %v403_v37 }
 0x103   : > { %807 = vmatmul.mubr.f32.vlgmr.msra.gmra.mxu1 %v404_v38 }
 0x1c3   : > { %v808_v44 = vpop.f32.mrf.mxu1 }
 0x1c4   : > { %v500_v45 = vadd.f32 %v808_v44, %v719_v43 }
 0x1c5   : > { %v494_v46 = vpop.f32.mrf.mxu1 }
 0x1c6   : > { %v495_v47 = vadd.f32 %v719_v43, %v494_v46  ;;  %v504_v49 = vmax.f32 %v500_v45, 0.0 }
 0x1c8   : > { %v503_v48 = vmax.f32 %v495_v47, 0.0 }
 0x1ca   : > { %841 = vmatprep.mubr.f32.mxu0 %v503_v48 }
 0x1cb   : > { %842 = vmatmul.mubr.f32.vlgmr.msra.gmra.mxu0 %v504_v49 }
 0x28b   : > { %v843_v51 = vpop.f32.mrf.mxu0 }
 0x28c   : > { %v600_v52 = vadd.f32 %v843_v51, %v720_v50 }
 0x28d   : > { %v594_v53 = vpop.f32.mrf.mxu0 }
 0x28e   : > { %v604_v54 = vmax.f32 %v600_v52, 0.0  ;;  %v595_v55 = vadd.f32 %v720_v50, %v594_v53 }
 0x290   : > { %606 = vst [vmem:[%s302_s16 + $0x8] sm:$0xff] %v604_v54  ;;  %v603_v56 = vmax.f32 %v595_v55, 0.0 }
 0x292   : > { %605 = vst [vmem:[%s302_s16] sm:$0xff] %v603_v56 }
 0x293   : > { %973 = shalt.err (!%p970_p3)
}
 0x294   : > { %s974_s9 = scalar_lea.hbm %s1194_s21, 256  ;;  %s978_s13 = scalar_lea.hbm %s1243_s7, 1024 }
 0x295   : > { %p975_p2 = scmp.ne.s32.totalorder %s1194_s21, %s974_s9  ;;  %p979_p7 = scmp.lt.s32.totalorder %s1194_s21, %s1243_s7 }
 0x296   : > { %p980_p6 = scmp.lt.s32.totalorder %s978_s13, %s974_s9 }
 0x297   : > { %p976_p4 = pnand %p975_p2, %p1115_p5 }
 0x298   : > { %p981_p9 = por %p980_p6, %p979_p7 }
 0x299   : > { %p977_p13 = pneg %p976_p4 }
 0x29b   : > { %p982_p10 = pnand %p981_p9, %p977_p13 }
 0x29d   : > { %985 = shalt.err (!%p982_p10)
}
 0x29e   : > { %s1035_s19 = smov 128   ;;  %s1036_s20 = smov 8  }
 0x29f   : > { %852 = dma.vmem_to_hbm [thread:$0]  (%p1115_p5), %s1189_s17, 256, %s1194_s21, %s1196_s22, %s1035_s19, %s1035_s19, %s1036_s20  }
 0x2a0 PF: > { %p869_p12 = scmp.ge.s32.totalorder %s1028_s27, 2  ;;  %s636_s23 = sand.u32 1, %s1016_s24  }
 0x2a1   : > { %p1253_p8 = scmp.ne.s32.totalorder %s1246_s12, 0  ;;  %s637_s28 = scalar_lea.sflag [#allocation4], %s636_s23 }
 0x2a3   : > { %p862_p11 = pnand %p869_p12, %p1253_p8 }
 0x2a5   : > { %p863_p0 = pneg %p862_p11 }
 0x2a7   : > { %1011 = dma.done.wait (%p863_p0), %s637_s28, 256  }
 0x2a8   : > { %1013 = vsyncadd (%p863_p0), %s637_s28, 4294967040  ;;  %p19_p1 = scmp.ge.s32.totalorder %s1102_s30, 6   ;;  %s1254_s24 = smov %s1020_s25 }
 0x2a9   : > { %s1255_s25 = smov %s1024_s26  ;;  %s1256_s26 = smov %s1113_s10 }
 0x2aa   : > { %s1257_s27 = smov %s1102_s30  ;;  %21 = sbr.rel (!%p19_p1) target bundleno = 5 (0x5), region = 92 }
 0x2af   :  { %642 = vsyncpa [#allocation3], 1 }
 0x2b0   :  { %644 = vsyncpa [#allocation3 + $0x1], 1 }
 0x2b1   :  { %645 = vsyncpa [#allocation6], 1 }
 0x2b2   :  { %646 = vsyncpa [#allocation4], 1 }
 0x2b3   :  { %648 = vsyncpa [#allocation4 + $0x1], 1 }

</bundles_post_ra>
